<compile_context>
chip_gen: v6e
topology: v6e:2x2x1
jax: 0.10.0
libtpu: 0.0.40
codegen_flags: <defaults>
</compile_context>

<pallas_src>
import jax
import jax.numpy as jnp
from jax.experimental import pallas as pl
from jax.experimental.pallas import tpu as pltpu

LANES = 128


def _round_up(n, m):
    return ((n + m - 1) // m) * m


# --------------------------------------------------------------------------
# Kernels
# --------------------------------------------------------------------------
def _mlp_resident_kernel(x_ref, w1_ref, b1_ref, w2_ref, b2_ref, o_ref):
    # First linear (bf16 MXU matmul, f32 accumulation) + bias + ReLU (f32 VPU)
    h = jnp.dot(x_ref[...], w1_ref[...], preferred_element_type=jnp.float32)
    h = jnp.maximum(h + b1_ref[...], 0.0)                 # (TB, Dh) + (1, Dh)
    # Second linear: feed bf16 into the MXU, accumulate in f32
    y = jnp.dot(h.astype(w2_ref.dtype), w2_ref[...],
                preferred_element_type=jnp.float32)
    y = jnp.maximum(y + b2_ref[...], 0.0)                 # (TB, Do) + (1, Do)
    o_ref[...] = y.astype(o_ref.dtype)


def _mlp_stream_kernel(x_ref, w1_ref, b1_ref, w2_ref, b2_ref, o_ref, acc_ref):
    # Hidden dim streamed as innermost ("arbitrary") grid axis.
    k = pl.program_id(1)

    @pl.when(k == 0)
    def _init():
        acc_ref[...] = jnp.zeros_like(acc_ref)

    h = jnp.dot(x_ref[...], w1_ref[...], preferred_element_type=jnp.float32)
    h = jnp.maximum(h + b1_ref[...], 0.0)                 # ReLU per hidden chunk
    acc_ref[...] += jnp.dot(h.astype(w2_ref.dtype), w2_ref[...],
                            preferred_element_type=jnp.float32)

    @pl.when(k == pl.num_programs(1) - 1)
    def _finalize():
        o_ref[...] = jnp.maximum(acc_ref[...] + b2_ref[...], 0.0).astype(o_ref.dtype)


# --------------------------------------------------------------------------
# Wrapper helpers
# --------------------------------------------------------------------------
def _vmem_physical_bytes():
    try:
        return int(pltpu.get_tpu_info().vmem_capacity_bytes)
    except Exception:
        return 64 * 1024 * 1024  # conservative default (v7x per-TC VMEM)


def _clamp_vmem(need_bytes, budget):
    return int(min(budget, max(16 * 1024 * 1024, int(need_bytes * 1.25))))


def _pick_tile_b(B, bytes_for_tile, budget):
    """Largest batch tile (multiple of 16, min 8) whose VMEM footprint fits."""
    if B <= 8:
        return 8
    cap = min(1024, _round_up(B, 16))
    if B >= 32:
        # Ensure >= 2 grid steps so ("parallel",) can shard across the 2 TCs
        # on v7x (harmless sequential steps on v5e/v6e).
        cap = min(cap, _round_up(pl.cdiv(B, 2), 16))
    tb = cap
    while tb > 16 and bytes_for_tile(tb) > budget:
        tb = max(16, _round_up(tb // 2, 16))
    return tb


def prepare_mlp_params(w1, b1, w2, b2):
    """Pad / cast parameters ONCE (hoisted out of the per-call path).

    w1: (d_in, d_hidden); b1: (d_hidden,); w2: (d_hidden, d_out); b2: (d_out,)
    Weights are padded to lane-multiples of 128 and cast to bf16; biases stay
    f32.  Zero padding keeps semantics exact (padded hidden units get zero
    weights/bias -> contribute nothing; padded output columns are sliced off).
    """
    d_in, d_hidden = w1.shape
    d_out = w2.shape[1]
    d_in_p = _round_up(d_in, LANES)
    d_h_p = _round_up(d_hidden, LANES)
    d_out_p = _round_up(d_out, LANES)

    w1_p = jnp.zeros((d_in_p, d_h_p), jnp.bfloat16).at[:d_in, :d_hidden].set(
        w1.astype(jnp.bfloat16))
    w2_p = jnp.zeros((d_h_p, d_out_p), jnp.bfloat16).at[:d_hidden, :d_out].set(
        w2.astype(jnp.bfloat16))
    b1_p = jnp.zeros((1, d_h_p), jnp.float32).at[0, :d_hidden].set(
        b1.astype(jnp.float32))
    b2_p = jnp.zeros((1, d_out_p), jnp.float32).at[0, :d_out].set(
        b2.astype(jnp.float32))
    return dict(w1=w1_p, b1=b1_p, w2=w2_p, b2=b2_p,
                d_in=d_in, d_hidden=d_hidden, d_out=d_out)


def _resident_call(x_p, w1_p, b1_p, w2_p, b2_p, *, tile_b, out_dtype,
                   vmem_bytes, single_buffer):
    B, d_in_p = x_p.shape
    d_h_p = w1_p.shape[1]
    d_out_p = w2_p.shape[1]
    grid = (pl.cdiv(B, tile_b),)
    # Constant index_map -> weights/biases are DMA'd once and stay resident;
    # single-buffering them halves their VMEM footprint.
    wkw = dict(pipeline_mode=pl.Buffered(1)) if single_buffer else {}
    return pl.pallas_call(
        _mlp_resident_kernel,
        out_shape=jax.ShapeDtypeStruct((B, d_out_p), out_dtype),
        grid=grid,
        in_specs=[
            pl.BlockSpec((tile_b, d_in_p), lambda i: (i, 0)),        # x: batch-tiled
            pl.BlockSpec((d_in_p, d_h_p), lambda i: (0, 0), **wkw),  # w1: resident
            pl.BlockSpec((1, d_h_p), lambda i: (0, 0), **wkw),       # b1: resident
            pl.BlockSpec((d_h_p, d_out_p), lambda i: (0, 0), **wkw), # w2: resident
            pl.BlockSpec((1, d_out_p), lambda i: (0, 0), **wkw),     # b2: resident
        ],
        out_specs=pl.BlockSpec((tile_b, d_out_p), lambda i: (i, 0)),
        compiler_params=pltpu.CompilerParams(
            dimension_semantics=("parallel",),
            vmem_limit_bytes=vmem_bytes,
        ),
    )(x_p, w1_p, b1_p, w2_p, b2_p)


def _stream_call(x_p, w1_p, b1_p, w2_p, b2_p, *, tile_b, tile_h, out_dtype,
                 vmem_bytes):
    B, d_in_p = x_p.shape
    d_h_p = w1_p.shape[1]
    d_out_p = w2_p.shape[1]
    assert d_h_p % tile_h == 0
    grid = (pl.cdiv(B, tile_b), d_h_p // tile_h)
    return pl.pallas_call(
        _mlp_stream_kernel,
        out_shape=jax.ShapeDtypeStruct((B, d_out_p), out_dtype),
        grid=grid,
        in_specs=[
            pl.BlockSpec((tile_b, d_in_p), lambda i, k: (i, 0)),   # x
            pl.BlockSpec((d_in_p, tile_h), lambda i, k: (0, k)),   # w1 column blk
            pl.BlockSpec((1, tile_h), lambda i, k: (0, k)),        # b1 chunk
            pl.BlockSpec((tile_h, d_out_p), lambda i, k: (k, 0)),  # w2 row blk
            pl.BlockSpec((1, d_out_p), lambda i, k: (0, 0)),       # b2
        ],
        out_specs=pl.BlockSpec((tile_b, d_out_p), lambda i, k: (i, 0)),
        scratch_shapes=[pltpu.VMEM((tile_b, d_out_p), jnp.float32)],
        compiler_params=pltpu.CompilerParams(
            dimension_semantics=("parallel", "arbitrary"),
            vmem_limit_bytes=vmem_bytes,
        ),
    )(x_p, w1_p, b1_p, w2_p, b2_p)


def mlp_apply(x, params, *, out_dtype=jnp.float32, force_stream=False,
              tile_h=None):
    """x: (B, d_in) -> (B, d_out) in out_dtype, using pre-padded params."""
    B, d_in = x.shape
    assert d_in == params["d_in"]
    w1_p, b1_p, w2_p, b2_p = params["w1"], params["b1"], params["w2"], params["b2"]
    d_in_p, d_h_p = w1_p.shape
    d_out_p = w2_p.shape[1]
    d_out = params["d_out"]

    # x: fast path (cast only) when already lane-aligned; otherwise pad lanes.
    # Batch is NOT padded -- the trailing grid block is a partial tile.
    if d_in_p == d_in:
        x_p = x.astype(jnp.bfloat16)
    else:
        x_p = jnp.zeros((B, d_in_p), jnp.bfloat16).at[:, :d_in].set(
            x.astype(jnp.bfloat16))

    phys = _vmem_physical_bytes()
    budget = int(phys * 0.75)          # ~96 MiB on v5e/v6e, ~48 MiB on v7x
    out_itemsize = jnp.dtype(out_dtype).itemsize

    # Resident bf16 weights + f32 biases (single pipeline buffer).
    w_res = (d_in_p * d_h_p + d_h_p * d_out_p) * 2 + (d_h_p + d_out_p) * 4

    def per_tile(tb):
        return (2 * tb * d_in_p * 2                # x tile (bf16, double-buffered)
                + 2 * tb * d_out_p * out_itemsize  # out tile (double-buffered)
                + tb * d_h_p * 4                   # live f32 hidden intermediate
                + tb * d_out_p * 4)                # live f32 pre-activation y

    def stream_need(tb, th):
        return (2 * tb * d_in_p * 2                # x blocks
                + 2 * d_in_p * th * 2              # w1 column blocks
                + 2 * th * d_out_p * 2             # w2 row blocks
                + 2 * th * 4 + 2 * d_out_p * 4     # bias blocks
                + tb * d_out_p * 4                 # f32 accumulator scratch
                + 2 * tb * d_out_p * out_itemsize  # out blocks
                + tb * th * 4                      # live f32 hidden chunk
                + tb * d_out_p * 4)                # live f32 partial product

    # Resident path only if even DOUBLE-buffered weights + a minimal batch
    # tile fit (covers the non-Buffered(1) fallback on every generation).
    resident_ok = (not force_stream) and (2 * w_res + per_tile(16) <= budget)

    if resident_ok:
        try:
            tb = _pick_tile_b(B, lambda t: w_res + per_tile(t), budget)
            vmem_bytes = _clamp_vmem(w_res + per_tile(tb), budget)
            out_p = _resident_call(x_p, w1_p, b1_p, w2_p, b2_p, tile_b=tb,
                                   out_dtype=out_dtype, vmem_bytes=vmem_bytes,
                                   single_buffer=True)
        except Exception:
            # pl.Buffered(1) unsupported on this jax version: fall back to the
            # default double-buffered weights and re-derive the batch tile.
            tb = _pick_tile_b(B, lambda t: 2 * w_res + per_tile(t), budget)
            vmem_bytes = _clamp_vmem(2 * w_res + per_tile(tb), budget)
            out_p = _resident_call(x_p, w1_p, b1_p, w2_p, b2_p, tile_b=tb,
                                   out_dtype=out_dtype, vmem_bytes=vmem_bytes,
                                   single_buffer=False)
    else:
        # Weight-streaming path: hidden dim tiled as trailing reduction axis.
        est_th = min(512, d_h_p)
        tb = _pick_tile_b(B, lambda t: stream_need(t, est_th), budget)
        if tile_h is None:
            th = 128
            for cand in (2048, 1024, 512, 256):
                if d_h_p % cand == 0 and stream_need(tb, cand) <= budget:
                    th = cand
                    break
        else:
            th = tile_h
        vmem_bytes = _clamp_vmem(stream_need(tb, th), budget)
        out_p = _stream_call(x_p, w1_p, b1_p, w2_p, b2_p, tile_b=tb, tile_h=th,
                             out_dtype=out_dtype, vmem_bytes=vmem_bytes)

    return out_p[:, :d_out] if d_out_p != d_out else out_p


def mlp_forward(x, w1, b1, w2, b2, **kwargs):
    """Convenience one-shot API (pads params per call -- prefer prepare+apply)."""
    return mlp_apply(x, prepare_mlp_params(w1, b1, w2, b2), **kwargs)


def _ref_mlp(x, w1, b1, w2, b2):
    # Pure-JAX f32 reference of the PyTorch forward.
    h = jnp.maximum(x @ w1 + b1, 0.0)
    return jnp.maximum(h @ w2 + b2, 0.0)


if __name__ == "__main__":
    # Small shapes implied by the module: d_in=32, d_hidden=64, d_out=16, batch=8
    B, d_in, d_hidden, d_out = 8, 32, 64, 16

    key = jax.random.PRNGKey(0)
    kx, k1, kb1, k2, kb2, k3, kb3, k4, kb4 = jax.random.split(key, 9)

    x = jax.random.normal(kx, (B, d_in), dtype=jnp.float32)
    # "Linear" parameters stored as [in, out] (i.e. W.T of torch's weight)
    w1 = jax.random.normal(k1, (d_in, d_hidden), dtype=jnp.float32) * 0.1
    b1 = jax.random.normal(kb1, (d_hidden,), dtype=jnp.float32) * 0.1
    w2 = jax.random.normal(k2, (d_hidden, d_out), dtype=jnp.float32) * 0.1
    b2 = jax.random.normal(kb2, (d_out,), dtype=jnp.float32) * 0.1

    # Parameter padding/cast is hoisted out of the per-call path.
    params = prepare_mlp_params(w1, b1, w2, b2)

    out = mlp_apply(x, params)
    jax.block_until_ready(out)
    ref = _ref_mlp(x, w1, b1, w2, b2)
    assert out.shape == (B, d_out)
    # bf16 operands / f32 accumulation -> relative error ~1e-2
    assert jnp.allclose(out, ref, atol=3e-2, rtol=3e-2), (
        float(jnp.max(jnp.abs(out - ref))))

    # Multi-step batch grid + ragged trailing tile (B not a multiple of 16).
    B2 = 200
    x2 = jax.random.normal(jax.random.PRNGKey(1), (B2, d_in), dtype=jnp.float32)
    out2 = mlp_apply(x2, params)
    jax.block_until_ready(out2)
    ref2 = _ref_mlp(x2, w1, b1, w2, b2)
    assert out2.shape == (B2, d_out)
    assert jnp.allclose(out2, ref2, atol=3e-2, rtol=3e-2), (
        float(jnp.max(jnp.abs(out2 - ref2))))

    # Exercise the weight-streaming path (hidden dim split into 2 chunks).
    B3, d_hidden3 = 64, 256
    x3 = jax.random.normal(k3, (B3, d_in), dtype=jnp.float32)
    w1b = jax.random.normal(k4, (d_in, d_hidden3), dtype=jnp.float32) * 0.1
    b1b = jax.random.normal(kb3, (d_hidden3,), dtype=jnp.float32) * 0.1
    w2b = jax.random.normal(kb4, (d_hidden3, d_out), dtype=jnp.float32) * 0.1
    b2b = jax.random.normal(jax.random.PRNGKey(2), (d_out,), dtype=jnp.float32) * 0.1
    params3 = prepare_mlp_params(w1b, b1b, w2b, b2b)
    out3 = mlp_apply(x3, params3, force_stream=True, tile_h=128)
    jax.block_until_ready(out3)
    ref3 = _ref_mlp(x3, w1b, b1b, w2b, b2b)
    assert out3.shape == (B3, d_out)
    assert jnp.allclose(out3, ref3, atol=3e-2, rtol=3e-2), (
        float(jnp.max(jnp.abs(out3 - ref3))))

    print("KERNEL_OK")
</pallas_src>

<mosaic_0001>
module attributes {stable_mosaic.version = 11 : i64} {
  func.func @_mlp_resident_kernel(%arg0: i32, %arg1: memref<8x128xbf16, #tpu.memory_space<vmem>>, %arg2: memref<128x128xbf16, #tpu.memory_space<vmem>>, %arg3: memref<1x128xf32, #tpu.memory_space<vmem>>, %arg4: memref<128x128xbf16, #tpu.memory_space<vmem>>, %arg5: memref<1x128xf32, #tpu.memory_space<vmem>>, %arg6: memref<8x128xf32, #tpu.memory_space<vmem>>) attributes {dimension_semantics = [#tpu.dimension_semantics<parallel>], iteration_bounds = array<i64: 1>, scalar_prefetch = 0 : i64, scratch_operands = 0 : i64, tpu.core_type = #tpu.core_type<tc>, window_params = [{transform_indices = @transform_0, window_bounds = array<i64: 8, 128>}, {pipeline_mode = #tpu.pipeline_mode<synchronous>, transform_indices = @transform_1, window_bounds = array<i64: 128, 128>}, {pipeline_mode = #tpu.pipeline_mode<synchronous>, transform_indices = @transform_2, window_bounds = array<i64: 1, 128>}, {pipeline_mode = #tpu.pipeline_mode<synchronous>, transform_indices = @transform_3, window_bounds = array<i64: 128, 128>}, {pipeline_mode = #tpu.pipeline_mode<synchronous>, transform_indices = @transform_4, window_bounds = array<i64: 1, 128>}, {transform_indices = @transform_5, window_bounds = array<i64: 8, 128>}]} {
    %c0 = arith.constant 0 : index
    %c0_0 = arith.constant 0 : index
    %0 = vector.load %arg1[%c0, %c0_0] : memref<8x128xbf16, #tpu.memory_space<vmem>>, vector<8x128xbf16>
    %c0_1 = arith.constant 0 : index
    %c0_2 = arith.constant 0 : index
    %1 = vector.load %arg2[%c0_1, %c0_2] : memref<128x128xbf16, #tpu.memory_space<vmem>>, vector<128x128xbf16>
    %cst = arith.constant dense<0.000000e+00> : vector<8x128xf32>
    %2 = tpu.matmul %0, %1, %cst {dimension_numbers = #tpu.dot_dimension_numbers<[1], [0], [0], [1], [0, 0, 1, 1], [], []>} : vector<8x128xbf16>, vector<128x128xbf16>, vector<8x128xf32> -> vector<8x128xf32>
    %c0_3 = arith.constant 0 : index
    %c0_4 = arith.constant 0 : index
    %3 = vector.load %arg3[%c0_3, %c0_4] : memref<1x128xf32, #tpu.memory_space<vmem>>, vector<1x128xf32>
    %4 = vector.broadcast %3 : vector<1x128xf32> to vector<8x128xf32>
    %5 = arith.addf %2, %4 : vector<8x128xf32>
    %cst_5 = arith.constant 0.000000e+00 : f32
    %6 = vector.broadcast %cst_5 : f32 to vector<8x128xf32>
    %7 = arith.maximumf %5, %6 : vector<8x128xf32>
    %8 = arith.truncf %7 : vector<8x128xf32> to vector<8x128xbf16>
    %c0_6 = arith.constant 0 : index
    %c0_7 = arith.constant 0 : index
    %9 = vector.load %arg4[%c0_6, %c0_7] : memref<128x128xbf16, #tpu.memory_space<vmem>>, vector<128x128xbf16>
    %cst_8 = arith.constant dense<0.000000e+00> : vector<8x128xf32>
    %10 = tpu.matmul %8, %9, %cst_8 {dimension_numbers = #tpu.dot_dimension_numbers<[1], [0], [0], [1], [0, 0, 1, 1], [], []>} : vector<8x128xbf16>, vector<128x128xbf16>, vector<8x128xf32> -> vector<8x128xf32>
    %c0_9 = arith.constant 0 : index
    %c0_10 = arith.constant 0 : index
    %11 = vector.load %arg5[%c0_9, %c0_10] : memref<1x128xf32, #tpu.memory_space<vmem>>, vector<1x128xf32>
    %12 = vector.broadcast %11 : vector<1x128xf32> to vector<8x128xf32>
    %13 = arith.addf %10, %12 : vector<8x128xf32>
    %cst_11 = arith.constant 0.000000e+00 : f32
    %14 = vector.broadcast %cst_11 : f32 to vector<8x128xf32>
    %15 = arith.maximumf %13, %14 : vector<8x128xf32>
    %c0_12 = arith.constant 0 : index
    %c0_13 = arith.constant 0 : index
    %16 = vector.load %arg6[%c0_12, %c0_13] : memref<8x128xf32, #tpu.memory_space<vmem>>, vector<8x128xf32>
    tpu.vector_store %arg6[%c0_12, %c0_13], %15 {strides = array<i32>} : memref<8x128xf32, #tpu.memory_space<vmem>>, vector<8x128xf32>,
    return
  }
  func.func @transform_0(%arg0: i32) -> (i32, i32) {
    %c0_i32 = arith.constant 0 : i32
    %c0_i32_0 = arith.constant 0 : i32
    return %arg0, %c0_i32 : i32, i32
  }
  func.func @transform_1(%arg0: i32) -> (i32, i32) {
    %c0_i32 = arith.constant 0 : i32
    %c0_i32_0 = arith.constant 0 : i32
    %c0_i32_1 = arith.constant 0 : i32
    return %c0_i32, %c0_i32_0 : i32, i32
  }
  func.func @transform_2(%arg0: i32) -> (i32, i32) {
    %c0_i32 = arith.constant 0 : i32
    %c0_i32_0 = arith.constant 0 : i32
    %c0_i32_1 = arith.constant 0 : i32
    return %c0_i32, %c0_i32_0 : i32, i32
  }
  func.func @transform_3(%arg0: i32) -> (i32, i32) {
    %c0_i32 = arith.constant 0 : i32
    %c0_i32_0 = arith.constant 0 : i32
    %c0_i32_1 = arith.constant 0 : i32
    return %c0_i32, %c0_i32_0 : i32, i32
  }
  func.func @transform_4(%arg0: i32) -> (i32, i32) {
    %c0_i32 = arith.constant 0 : i32
    %c0_i32_0 = arith.constant 0 : i32
    %c0_i32_1 = arith.constant 0 : i32
    return %c0_i32, %c0_i32_0 : i32, i32
  }
  func.func @transform_5(%arg0: i32) -> (i32, i32) {
    %c0_i32 = arith.constant 0 : i32
    %c0_i32_0 = arith.constant 0 : i32
    return %arg0, %c0_i32 : i32, i32
  }
}

module attributes {stable_mosaic.version = 11 : i64} {
  func.func @_mlp_resident_kernel(%arg0: i32, %arg1: memref<8x128xbf16, #tpu.memory_space<vmem>>, %arg2: memref<128x128xbf16, #tpu.memory_space<vmem>>, %arg3: memref<1x128xf32, #tpu.memory_space<vmem>>, %arg4: memref<128x128xbf16, #tpu.memory_space<vmem>>, %arg5: memref<1x128xf32, #tpu.memory_space<vmem>>, %arg6: memref<8x128xf32, #tpu.memory_space<vmem>>) attributes {dimension_semantics = [#tpu.dimension_semantics<parallel>], iteration_bounds = array<i64: 1>, scalar_prefetch = 0 : i64, scratch_operands = 0 : i64, tpu.core_type = #tpu.core_type<tc>, window_params = [{transform_indices = @transform_0, window_bounds = array<i64: 8, 128>}, {pipeline_mode = #tpu.pipeline_mode<synchronous>, transform_indices = @transform_1, window_bounds = array<i64: 128, 128>}, {pipeline_mode = #tpu.pipeline_mode<synchronous>, transform_indices = @transform_2, window_bounds = array<i64: 1, 128>}, {pipeline_mode = #tpu.pipeline_mode<synchronous>, transform_indices = @transform_3, window_bounds = array<i64: 128, 128>}, {pipeline_mode = #tpu.pipeline_mode<synchronous>, transform_indices = @transform_4, window_bounds = array<i64: 1, 128>}, {transform_indices = @transform_5, window_bounds = array<i64: 8, 128>}]} {
    %c0 = arith.constant 0 : index
    %c0_0 = arith.constant 0 : index
    %0 = vector.load %arg1[%c0, %c0_0] : memref<8x128xbf16, #tpu.memory_space<vmem>>, vector<8x128xbf16>
    %c0_1 = arith.constant 0 : index
    %c0_2 = arith.constant 0 : index
    %1 = vector.load %arg2[%c0_1, %c0_2] : memref<128x128xbf16, #tpu.memory_space<vmem>>, vector<128x128xbf16>
    %cst = arith.constant dense<0.000000e+00> : vector<8x128xf32>
    %2 = tpu.matmul %0, %1, %cst {dimension_numbers = #tpu.dot_dimension_numbers<[1], [0], [0], [1], [0, 0, 1, 1], [], []>} : vector<8x128xbf16>, vector<128x128xbf16>, vector<8x128xf32> -> vector<8x128xf32>
    %c0_3 = arith.constant 0 : index
    %c0_4 = arith.constant 0 : index
    %3 = vector.load %arg3[%c0_3, %c0_4] : memref<1x128xf32, #tpu.memory_space<vmem>>, vector<1x128xf32>
    %4 = vector.broadcast %3 : vector<1x128xf32> to vector<8x128xf32>
    %5 = arith.addf %2, %4 : vector<8x128xf32>
    %cst_5 = arith.constant 0.000000e+00 : f32
    %6 = vector.broadcast %cst_5 : f32 to vector<8x128xf32>
    %7 = arith.maximumf %5, %6 : vector<8x128xf32>
    %8 = arith.truncf %7 : vector<8x128xf32> to vector<8x128xbf16>
    %c0_6 = arith.constant 0 : index
    %c0_7 = arith.constant 0 : index
    %9 = vector.load %arg4[%c0_6, %c0_7] : memref<128x128xbf16, #tpu.memory_space<vmem>>, vector<128x128xbf16>
    %cst_8 = arith.constant dense<0.000000e+00> : vector<8x128xf32>
    %10 = tpu.matmul %8, %9, %cst_8 {dimension_numbers = #tpu.dot_dimension_numbers<[1], [0], [0], [1], [0, 0, 1, 1], [], []>} : vector<8x128xbf16>, vector<128x128xbf16>, vector<8x128xf32> -> vector<8x128xf32>
    %c0_9 = arith.constant 0 : index
    %c0_10 = arith.constant 0 : index
    %11 = vector.load %arg5[%c0_9, %c0_10] : memref<1x128xf32, #tpu.memory_space<vmem>>, vector<1x128xf32>
    %12 = vector.broadcast %11 : vector<1x128xf32> to vector<8x128xf32>
    %13 = arith.addf %10, %12 : vector<8x128xf32>
    %cst_11 = arith.constant 0.000000e+00 : f32
    %14 = vector.broadcast %cst_11 : f32 to vector<8x128xf32>
    %15 = arith.maximumf %13, %14 : vector<8x128xf32>
    %c0_12 = arith.constant 0 : index
    %c0_13 = arith.constant 0 : index
    %16 = vector.load %arg6[%c0_12, %c0_13] : memref<8x128xf32, #tpu.memory_space<vmem>>, vector<8x128xf32>
    tpu.vector_store %arg6[%c0_12, %c0_13], %15 {strides = array<i32>} : memref<8x128xf32, #tpu.memory_space<vmem>>, vector<8x128xf32>,
    return
  }
  func.func @transform_0(%arg0: i32) -> (i32, i32) {
    %c0_i32 = arith.constant 0 : i32
    %c0_i32_0 = arith.constant 0 : i32
    return %arg0, %c0_i32 : i32, i32
  }
  func.func @transform_1(%arg0: i32) -> (i32, i32) {
    %c0_i32 = arith.constant 0 : i32
    %c0_i32_0 = arith.constant 0 : i32
    %c0_i32_1 = arith.constant 0 : i32
    return %c0_i32, %c0_i32_0 : i32, i32
  }
  func.func @transform_2(%arg0: i32) -> (i32, i32) {
    %c0_i32 = arith.constant 0 : i32
    %c0_i32_0 = arith.constant 0 : i32
    %c0_i32_1 = arith.constant 0 : i32
    return %c0_i32, %c0_i32_0 : i32, i32
  }
  func.func @transform_3(%arg0: i32) -> (i32, i32) {
    %c0_i32 = arith.constant 0 : i32
    %c0_i32_0 = arith.constant 0 : i32
    %c0_i32_1 = arith.constant 0 : i32
    return %c0_i32, %c0_i32_0 : i32, i32
  }
  func.func @transform_4(%arg0: i32) -> (i32, i32) {
    %c0_i32 = arith.constant 0 : i32
    %c0_i32_0 = arith.constant 0 : i32
    %c0_i32_1 = arith.constant 0 : i32
    return %c0_i32, %c0_i32_0 : i32, i32
  }
  func.func @transform_5(%arg0: i32) -> (i32, i32) {
    %c0_i32 = arith.constant 0 : i32
    %c0_i32_0 = arith.constant 0 : i32
    return %arg0, %c0_i32 : i32, i32
  }
}

</mosaic_0001>

<bundles_post_ra>
// kernel: tpu_custom_call.1
= control target key start
LH: loop header
LB: loop body
LE: loop exit
PB: predicated region body
PF: predicated region fallthrough
CT: control target
= control target key end

     0   :  { %10 = vsyncpa [#allocation3], 0  ;;  %s546_s0 = inlined_call_operand.hbm [shape: bf16[8,128], index: 0, kind: input, shape index: {}]   ;;  %s547_s1 = inlined_call_operand.hbm [shape: bf16[128,128], index: 1, kind: input, shape index: {}]   ;;  %s548_s2 = inlined_call_operand.vmem [shape: f32[1,128], index: 2, kind: input, shape index: {}]   ;;  %s549_s3 = inlined_call_operand.hbm [shape: bf16[128,128], index: 3, kind: input, shape index: {}]   ;;  %s550_s4 = inlined_call_operand.vmem [shape: f32[1,128], index: 4, kind: input, shape index: {}]   ;;  %s551_s5 = inlined_call_operand.hbm [shape: f32[8,128], index: 5, kind: output, shape index: {}]  }
   0x1   :  { %11 = vsyncpa [#allocation6], 0 }
   0x2   :  { %12 = vsyncpa [#allocation4], 0  ;;  %s490_s18 = smov [#allocation5]  }
   0x3   :  { %s28_s19 = sshll.u32 %s490_s18, 4  ;;  %s29_s19 = int_to_ptr.vmem [resolvable:$true] %s28_s19 }
   0x4   :  { %s412_s20 = scalar_lea.vmem %s29_s19, 1024  ;;  %p417_p1 = scmp.lt.s32.totalorder %s29_s19, %s29_s19 }
   0x5   :  { %p413_p0 = scmp.ne.s32.totalorder %s29_s19, %s412_s20  ;;  %p418_p2 = scmp.lt.s32.totalorder %s412_s20, %s412_s20 }
   0x7   :  { %p419_p3 = por %p418_p2, %p417_p1 }
   0x9   :  { %p420_p4 = pnand %p419_p3, %p413_p0 }
   0xb   :  { %423 = shalt.err (!%p420_p4)
}
   0xc   :  { %s491_s21 = smov 64   ;;  %s492_s22 = smov 4  }
   0xd   :  { %34 = dma.hbm_to_vmem [thread:$0]  %s547_s1, 1024, %s29_s19, [#allocation6], %s491_s21, %s491_s21, %s492_s22  }
   0xe   :  { %s493_s25 = smov [#allocation2]   ;;  %s494_s27 = smov [#allocation7]  }
   0xf   :  { %s19_s26 = sshll.u32 %s493_s25, 4  ;;  %s42_s28 = sshll.u32 %s494_s27, 4  ;;  %s20_s26 = int_to_ptr.vmem [resolvable:$true] %s19_s26  ;;  %s43_s28 = int_to_ptr.vmem [resolvable:$true] %s42_s28 }
  0x10   :  { %s432_s29 = scalar_lea.vmem %s20_s26, 64  ;;  %p437_p6 = scmp.lt.s32.totalorder %s20_s26, %s20_s26 }
  0x11   :  { %p433_p5 = scmp.ne.s32.totalorder %s20_s26, %s432_s29  ;;  %p438_p7 = scmp.lt.s32.totalorder %s432_s29, %s432_s29 }
  0x13   :  { %p439_p8 = por %p438_p7, %p437_p6 }
  0x15   :  { %p440_p9 = pnand %p439_p8, %p433_p5 }
  0x17   :  { %443 = shalt.err (!%p440_p9)
}
  0x18   :  { %22 = dma.hbm_to_vmem [thread:$0]  %s546_s0, 64, %s20_s26, [#allocation3]  }
  0x19   :  { %s452_s7 = scalar_lea.vmem %s43_s28, 1024  ;;  %p457_p11 = scmp.lt.s32.totalorder %s43_s28, %s43_s28 }
  0x1a   :  { %p453_p10 = scmp.ne.s32.totalorder %s43_s28, %s452_s7  ;;  %p458_p12 = scmp.lt.s32.totalorder %s452_s7, %s452_s7 }
  0x1c   :  { %p459_p13 = por %p458_p12, %p457_p11 }
  0x1e   :  { %p460_p0 = pnand %p459_p13, %p453_p10 }
  0x20   :  { %463 = shalt.err (!%p460_p0)
}
  0x21   :  { %48 = dma.hbm_to_vmem [thread:$0]  %s549_s3, 1024, %s43_s28, [#allocation6], %s491_s21, %s491_s21, %s492_s22  }
  0x22   :  { %484 = dma.done.wait [#allocation3], 64  }
  0x23   :  { %485 = vsyncadd [#allocation3], 4294967232 }
  0x24   :  { %486 = dma.done.wait [#allocation6], 2048  }
  0x25   :  { %487 = vsyncadd [#allocation6], 4294965248  ;;  %v495_v0 = vmov 0.0   ;;  %vm496_vm0 = vmmov 0   ;;  %v388_v1 = vld [vmem:[#allocation5 + $0x38] sm:$0xff]   ;;  %v389_v2 = vld [vmem:[#allocation5 + $0x30] sm:$0xff]  }
  0x26   :  { %340 = vmatprep.subr.bf16.mxu0 %v495_v0  ;;  %356 = vmatprep.mubr.msk.bf16.mxu0 %vm496_vm0, %v495_v0  ;;  %v390_v3 = vld [vmem:[#allocation5 + $0x28] sm:$0xff]   ;;  %v396_v4 = vld [vmem:[#allocation7 + $0x38] sm:$0xff]   ;;  %v391_v5 = vld [vmem:[#allocation5 + $0x20] sm:$0xff]   ;;  %s497_s11 = smov [#allocation8]  }
  0x27   :  { %360 = vmatprep.subr.bf16.mxu1 %v495_v0  ;;  %376 = vmatprep.mubr.msk.bf16.mxu1 %vm496_vm0, %v495_v0  ;;  %v397_v6 = vld [vmem:[#allocation7 + $0x30] sm:$0xff]   ;;  %v392_v7 = vld [vmem:[#allocation5 + $0x18] sm:$0xff]   ;;  %v398_v8 = vld [vmem:[#allocation7 + $0x28] sm:$0xff]   ;;  %s294_s12 = sshll.u32 %s497_s11, 4  ;;  %s295_s12 = int_to_ptr.vmem [resolvable:$true] %s294_s12 }
  0x28   :  { %341 = vmatpush3.bf16.msra.mxu0 %v388_v1  ;;  %361 = vmatpush3.bf16.msra.mxu1 %v396_v4  ;;  %v393_v9 = vld [vmem:[#allocation5 + $0x10] sm:$0xff]   ;;  %v399_v10 = vld [vmem:[#allocation7 + $0x20] sm:$0xff]   ;;  %v394_v11 = vld [vmem:[#allocation5 + $0x8] sm:$0xff]   ;;  %p469_p2 = scmp.lt.s32.totalorder %s295_s12, %s295_s12 }
  0x29   :  { %342 = vmatprep.subr.bf16.mxu0 %v495_v0  ;;  %362 = vmatprep.subr.bf16.mxu1 %v495_v0  ;;  %v400_v12 = vld [vmem:[#allocation7 + $0x18] sm:$0xff]   ;;  %v395_v13 = vld [vmem:[#allocation5] sm:$0xff]   ;;  %v401_v14 = vld [vmem:[#allocation7 + $0x10] sm:$0xff]  }
  0x2a   :  { %v61_v15 = vld [vmem:[#allocation2] sm:$0xf]  ;;  %v402_v16 = vld [vmem:[#allocation7 + $0x8] sm:$0xff]   ;;  %v403_v17 = vld [vmem:[#allocation7] sm:$0xff]  }
  0x2b   :  { %v304_v18 = vld [vmem:[%s548_s2] ss:$0 sm:$0xff]  ;;  %s464_s2 = scalar_lea.vmem %s295_s12, 128 }
  0x2c   :  { %343 = vmatpush3.bf16.msra.mxu0 %v389_v2  ;;  %363 = vmatpush3.bf16.msra.mxu1 %v397_v6  ;;  %v313_v26 = vld [vmem:[%s550_s4] ss:$0 sm:$0xff]  ;;  %p465_p1 = scmp.ne.s32.totalorder %s295_s12, %s464_s2  ;;  %p470_p3 = scmp.lt.s32.totalorder %s464_s2, %s464_s2 }
  0x2d   :  { %344 = vmatprep.subr.bf16.mxu0 %v495_v0  ;;  %364 = vmatprep.subr.bf16.mxu1 %v495_v0 }
  0x2e   :  { %p471_p4 = por %p470_p3, %p469_p2 }
  0x30   :  { %345 = vmatpush3.bf16.msra.mxu0 %v390_v3  ;;  %365 = vmatpush3.bf16.msra.mxu1 %v398_v8  ;;  %p472_p5 = pnand %p471_p4, %p465_p1 }
  0x31   :  { %346 = vmatprep.subr.bf16.mxu0 %v495_v0  ;;  %366 = vmatprep.subr.bf16.mxu1 %v495_v0 }
  0x34   :  { %347 = vmatpush3.bf16.msra.mxu0 %v391_v5  ;;  %367 = vmatpush3.bf16.msra.mxu1 %v399_v10 }
  0x35   :  { %348 = vmatprep.subr.bf16.mxu0 %v495_v0  ;;  %368 = vmatprep.subr.bf16.mxu1 %v495_v0 }
  0x38   :  { %349 = vmatpush3.bf16.msra.mxu0 %v392_v7  ;;  %369 = vmatpush3.bf16.msra.mxu1 %v400_v12 }
  0x39   :  { %350 = vmatprep.subr.bf16.mxu0 %v495_v0  ;;  %370 = vmatprep.subr.bf16.mxu1 %v495_v0 }
  0x3c   :  { %351 = vmatpush3.bf16.msra.mxu0 %v393_v9  ;;  %371 = vmatpush3.bf16.msra.mxu1 %v401_v14 }
  0x3d   :  { %352 = vmatprep.subr.bf16.mxu0 %v495_v0  ;;  %372 = vmatprep.subr.bf16.mxu1 %v495_v0 }
  0x40   :  { %353 = vmatpush3.bf16.msra.mxu0 %v394_v11  ;;  %373 = vmatpush3.bf16.msra.mxu1 %v402_v16 }
  0x41   :  { %354 = vmatprep.subr.bf16.mxu0 %v495_v0  ;;  %374 = vmatprep.subr.bf16.mxu1 %v495_v0 }
  0x44   :  { %355 = vmatpush3.bf16.msra.mxu0 %v395_v13  ;;  %375 = vmatpush3.bf16.msra.mxu1 %v403_v17 }
  0x47   :  { %357 = vmatmul.mubr.bf16.vlgmr.msra.gmra.mxu0 %v61_v15 }
 0x107   :  { %v167_v19 = vpop.f32.mrf.mxu0 }
 0x108   :  { %v168_v20 = vadd.f32 %v304_v18, %v167_v19 }
 0x109   :  { %v358_v21 = vpop.f32.mrf.mxu0 }
 0x10a   :  { %v173_v22 = vmax.f32 %v168_v20, 0.0 }
 0x10b   :  { %v170_v23 = vpop.f32.mrf.mxu0 }
 0x10c   :  { %v174_v24 = vpack.c.bf16 %v173_v22, %v173_v22 }
 0x10d   :  { %v359_v25 = vpop.f32.mrf.mxu0 }
 0x10e   :  { %377 = vmatmul.mubr.bf16.vlgmr.msra.gmra.mxu1 %v174_v24 }
 0x1ce   :  { %v280_v27 = vpop.f32.mrf.mxu1 }
 0x1cf   :  { %v281_v28 = vadd.f32 %v313_v26, %v280_v27 }
 0x1d0   :  { %v378_v29 = vpop.f32.mrf.mxu1 }
 0x1d1   :  { %v286_v30 = vmax.f32 %v281_v28, 0.0 }
 0x1d2   :  { %v283_v31 = vpop.f32.mrf.mxu1 }
 0x1d3   :  { %287 = vst [vmem:[#allocation8] sm:$0xff] %v286_v30 }
 0x1d4   :  { %v379_v32 = vpop.f32.mrf.mxu1 }
 0x1d5   :  { %475 = shalt.err (!%p472_p5)
}
 0x1d6   :  { %297 = dma.vmem_to_hbm [thread:$0]  %s295_s12, 128, %s551_s5, [#allocation4]  }
 0x1d7   :  { %488 = dma.done.wait [#allocation4], 128  }
 0x1d8   :  { %489 = vsyncadd [#allocation4], 4294967168 }
 0x1d9   :  { %301 = vsyncpa [#allocation3], 1 }
 0x1da   :  { %302 = vsyncpa [#allocation6], 1 }
 0x1db   :  { %303 = vsyncpa [#allocation4], 1 }

// kernel: tpu_custom_call.1
= control target key start
LH: loop header
LB: loop body
LE: loop exit
PB: predicated region body
PF: predicated region fallthrough
CT: control target
= control target key end

     0   :  { %10 = vsyncpa [#allocation3], 0  ;;  %s546_s0 = inlined_call_operand.hbm [shape: bf16[8,128], index: 0, kind: input, shape index: {}]   ;;  %s547_s1 = inlined_call_operand.hbm [shape: bf16[128,128], index: 1, kind: input, shape index: {}]   ;;  %s548_s2 = inlined_call_operand.vmem [shape: f32[1,128], index: 2, kind: input, shape index: {}]   ;;  %s549_s3 = inlined_call_operand.hbm [shape: bf16[128,128], index: 3, kind: input, shape index: {}]   ;;  %s550_s4 = inlined_call_operand.vmem [shape: f32[1,128], index: 4, kind: input, shape index: {}]   ;;  %s551_s5 = inlined_call_operand.hbm [shape: f32[8,128], index: 5, kind: output, shape index: {}]  }
   0x1   :  { %11 = vsyncpa [#allocation6], 0 }
   0x2   :  { %12 = vsyncpa [#allocation4], 0  ;;  %s490_s18 = smov [#allocation5]  }
   0x3   :  { %s28_s19 = sshll.u32 %s490_s18, 4  ;;  %s29_s19 = int_to_ptr.vmem [resolvable:$true] %s28_s19 }
   0x4   :  { %s412_s20 = scalar_lea.vmem %s29_s19, 1024  ;;  %p417_p1 = scmp.lt.s32.totalorder %s29_s19, %s29_s19 }
   0x5   :  { %p413_p0 = scmp.ne.s32.totalorder %s29_s19, %s412_s20  ;;  %p418_p2 = scmp.lt.s32.totalorder %s412_s20, %s412_s20 }
   0x7   :  { %p419_p3 = por %p418_p2, %p417_p1 }
   0x9   :  { %p420_p4 = pnand %p419_p3, %p413_p0 }
   0xb   :  { %423 = shalt.err (!%p420_p4)
}
   0xc   :  { %s491_s21 = smov 64   ;;  %s492_s22 = smov 4  }
   0xd   :  { %34 = dma.hbm_to_vmem [thread:$0]  %s547_s1, 1024, %s29_s19, [#allocation6], %s491_s21, %s491_s21, %s492_s22  }
   0xe   :  { %s493_s25 = smov [#allocation2]   ;;  %s494_s27 = smov [#allocation7]  }
   0xf   :  { %s19_s26 = sshll.u32 %s493_s25, 4  ;;  %s42_s28 = sshll.u32 %s494_s27, 4  ;;  %s20_s26 = int_to_ptr.vmem [resolvable:$true] %s19_s26  ;;  %s43_s28 = int_to_ptr.vmem [resolvable:$true] %s42_s28 }
  0x10   :  { %s432_s29 = scalar_lea.vmem %s20_s26, 64  ;;  %p437_p6 = scmp.lt.s32.totalorder %s20_s26, %s20_s26 }
  0x11   :  { %p433_p5 = scmp.ne.s32.totalorder %s20_s26, %s432_s29  ;;  %p438_p7 = scmp.lt.s32.totalorder %s432_s29, %s432_s29 }
  0x13   :  { %p439_p8 = por %p438_p7, %p437_p6 }
  0x15   :  { %p440_p9 = pnand %p439_p8, %p433_p5 }
  0x17   :  { %443 = shalt.err (!%p440_p9)
}
  0x18   :  { %22 = dma.hbm_to_vmem [thread:$0]  %s546_s0, 64, %s20_s26, [#allocation3]  }
  0x19   :  { %s452_s7 = scalar_lea.vmem %s43_s28, 1024  ;;  %p457_p11 = scmp.lt.s32.totalorder %s43_s28, %s43_s28 }
  0x1a   :  { %p453_p10 = scmp.ne.s32.totalorder %s43_s28, %s452_s7  ;;  %p458_p12 = scmp.lt.s32.totalorder %s452_s7, %s452_s7 }
  0x1c   :  { %p459_p13 = por %p458_p12, %p457_p11 }
  0x1e   :  { %p460_p0 = pnand %p459_p13, %p453_p10 }
  0x20   :  { %463 = shalt.err (!%p460_p0)
}
  0x21   :  { %48 = dma.hbm_to_vmem [thread:$0]  %s549_s3, 1024, %s43_s28, [#allocation6], %s491_s21, %s491_s21, %s492_s22  }
  0x22   :  { %484 = dma.done.wait [#allocation3], 64  }
  0x23   :  { %485 = vsyncadd [#allocation3], 4294967232 }
  0x24   :  { %486 = dma.done.wait [#allocation6], 2048  }
  0x25   :  { %487 = vsyncadd [#allocation6], 4294965248  ;;  %v495_v0 = vmov 0.0   ;;  %vm496_vm0 = vmmov 0   ;;  %v388_v1 = vld [vmem:[#allocation5 + $0x38] sm:$0xff]   ;;  %v389_v2 = vld [vmem:[#allocation5 + $0x30] sm:$0xff]  }
  0x26   :  { %340 = vmatprep.subr.bf16.mxu0 %v495_v0  ;;  %356 = vmatprep.mubr.msk.bf16.mxu0 %vm496_vm0, %v495_v0  ;;  %v390_v3 = vld [vmem:[#allocation5 + $0x28] sm:$0xff]   ;;  %v396_v4 = vld [vmem:[#allocation7 + $0x38] sm:$0xff]   ;;  %v391_v5 = vld [vmem:[#allocation5 + $0x20] sm:$0xff]   ;;  %s497_s11 = smov [#allocation8]  }
  0x27   :  { %360 = vmatprep.subr.bf16.mxu1 %v495_v0  ;;  %376 = vmatprep.mubr.msk.bf16.mxu1 %vm496_vm0, %v495_v0  ;;  %v397_v6 = vld [vmem:[#allocation7 + $0x30] sm:$0xff]   ;;  %v392_v7 = vld [vmem:[#allocation5 + $0x18] sm:$0xff]   ;;  %v398_v8 = vld [vmem:[#allocation7 + $0x28] sm:$0xff]   ;;  %s294_s12 = sshll.u32 %s497_s11, 4  ;;  %s295_s12 = int_to_ptr.vmem [resolvable:$true] %s294_s12 }
  0x28   :  { %341 = vmatpush3.bf16.msra.mxu0 %v388_v1  ;;  %361 = vmatpush3.bf16.msra.mxu1 %v396_v4  ;;  %v393_v9 = vld [vmem:[#allocation5 + $0x10] sm:$0xff]   ;;  %v399_v10 = vld [vmem:[#allocation7 + $0x20] sm:$0xff]   ;;  %v394_v11 = vld [vmem:[#allocation5 + $0x8] sm:$0xff]   ;;  %p469_p2 = scmp.lt.s32.totalorder %s295_s12, %s295_s12 }
  0x29   :  { %342 = vmatprep.subr.bf16.mxu0 %v495_v0  ;;  %362 = vmatprep.subr.bf16.mxu1 %v495_v0  ;;  %v400_v12 = vld [vmem:[#allocation7 + $0x18] sm:$0xff]   ;;  %v395_v13 = vld [vmem:[#allocation5] sm:$0xff]   ;;  %v401_v14 = vld [vmem:[#allocation7 + $0x10] sm:$0xff]  }
  0x2a   :  { %v61_v15 = vld [vmem:[#allocation2] sm:$0xf]  ;;  %v402_v16 = vld [vmem:[#allocation7 + $0x8] sm:$0xff]   ;;  %v403_v17 = vld [vmem:[#allocation7] sm:$0xff]  }
  0x2b   :  { %v304_v18 = vld [vmem:[%s548_s2] ss:$0 sm:$0xff]  ;;  %s464_s2 = scalar_lea.vmem %s295_s12, 128 }
  0x2c   :  { %343 = vmatpush3.bf16.msra.mxu0 %v389_v2  ;;  %363 = vmatpush3.bf16.msra.mxu1 %v397_v6  ;;  %v313_v26 = vld [vmem:[%s550_s4] ss:$0 sm:$0xff]  ;;  %p465_p1 = scmp.ne.s32.totalorder %s295_s12, %s464_s2  ;;  %p470_p3 = scmp.lt.s32.totalorder %s464_s2, %s464_s2 }
  0x2d   :  { %344 = vmatprep.subr.bf16.mxu0 %v495_v0  ;;  %364 = vmatprep.subr.bf16.mxu1 %v495_v0 }
  0x2e   :  { %p471_p4 = por %p470_p3, %p469_p2 }
  0x30   :  { %345 = vmatpush3.bf16.msra.mxu0 %v390_v3  ;;  %365 = vmatpush3.bf16.msra.mxu1 %v398_v8  ;;  %p472_p5 = pnand %p471_p4, %p465_p1 }
  0x31   :  { %346 = vmatprep.subr.bf16.mxu0 %v495_v0  ;;  %366 = vmatprep.subr.bf16.mxu1 %v495_v0 }
  0x34   :  { %347 = vmatpush3.bf16.msra.mxu0 %v391_v5  ;;  %367 = vmatpush3.bf16.msra.mxu1 %v399_v10 }
  0x35   :  { %348 = vmatprep.subr.bf16.mxu0 %v495_v0  ;;  %368 = vmatprep.subr.bf16.mxu1 %v495_v0 }
  0x38   :  { %349 = vmatpush3.bf16.msra.mxu0 %v392_v7  ;;  %369 = vmatpush3.bf16.msra.mxu1 %v400_v12 }
  0x39   :  { %350 = vmatprep.subr.bf16.mxu0 %v495_v0  ;;  %370 = vmatprep.subr.bf16.mxu1 %v495_v0 }
  0x3c   :  { %351 = vmatpush3.bf16.msra.mxu0 %v393_v9  ;;  %371 = vmatpush3.bf16.msra.mxu1 %v401_v14 }
  0x3d   :  { %352 = vmatprep.subr.bf16.mxu0 %v495_v0  ;;  %372 = vmatprep.subr.bf16.mxu1 %v495_v0 }
  0x40   :  { %353 = vmatpush3.bf16.msra.mxu0 %v394_v11  ;;  %373 = vmatpush3.bf16.msra.mxu1 %v402_v16 }
  0x41   :  { %354 = vmatprep.subr.bf16.mxu0 %v495_v0  ;;  %374 = vmatprep.subr.bf16.mxu1 %v495_v0 }
  0x44   :  { %355 = vmatpush3.bf16.msra.mxu0 %v395_v13  ;;  %375 = vmatpush3.bf16.msra.mxu1 %v403_v17 }
  0x47   :  { %357 = vmatmul.mubr.bf16.vlgmr.msra.gmra.mxu0 %v61_v15 }
 0x107   :  { %v167_v19 = vpop.f32.mrf.mxu0 }
 0x108   :  { %v168_v20 = vadd.f32 %v304_v18, %v167_v19 }
 0x109   :  { %v358_v21 = vpop.f32.mrf.mxu0 }
 0x10a   :  { %v173_v22 = vmax.f32 %v168_v20, 0.0 }
 0x10b   :  { %v170_v23 = vpop.f32.mrf.mxu0 }
 0x10c   :  { %v174_v24 = vpack.c.bf16 %v173_v22, %v173_v22 }
 0x10d   :  { %v359_v25 = vpop.f32.mrf.mxu0 }
 0x10e   :  { %377 = vmatmul.mubr.bf16.vlgmr.msra.gmra.mxu1 %v174_v24 }
 0x1ce   :  { %v280_v27 = vpop.f32.mrf.mxu1 }
 0x1cf   :  { %v281_v28 = vadd.f32 %v313_v26, %v280_v27 }
 0x1d0   :  { %v378_v29 = vpop.f32.mrf.mxu1 }
 0x1d1   :  { %v286_v30 = vmax.f32 %v281_v28, 0.0 }
 0x1d2   :  { %v283_v31 = vpop.f32.mrf.mxu1 }
 0x1d3   :  { %287 = vst [vmem:[#allocation8] sm:$0xff] %v286_v30 }
 0x1d4   :  { %v379_v32 = vpop.f32.mrf.mxu1 }
 0x1d5   :  { %475 = shalt.err (!%p472_p5)
}
 0x1d6   :  { %297 = dma.vmem_to_hbm [thread:$0]  %s295_s12, 128, %s551_s5, [#allocation4]  }
 0x1d7   :  { %488 = dma.done.wait [#allocation4], 128  }
 0x1d8   :  { %489 = vsyncadd [#allocation4], 4294967168 }
 0x1d9   :  { %301 = vsyncpa [#allocation3], 1 }
 0x1da   :  { %302 = vsyncpa [#allocation6], 1 }
 0x1db   :  { %303 = vsyncpa [#allocation4], 1 }

</bundles_post_ra>
